<compile_context>
chip_gen: v7x
topology: tpu7x:2x2x1
jax: 0.10.0
libtpu: 0.0.40
codegen_flags: <defaults>
</compile_context>

<pallas_src>
import functools

import jax
import jax.numpy as jnp
import numpy as np
from jax.experimental import pallas as pl
from jax.experimental.pallas import tpu as pltpu

LANES = 128
SUBLANES = 8


def _detect_num_cores():
    """2 on dual-TensorCore chips (v7x), 1 otherwise. Safe fallback: 1."""
    try:
        kind = jax.devices()[0].device_kind.lower().replace(" ", "")
    except Exception:
        return 1
    return 2 if ("v7" in kind or "tpu7" in kind) else 1


def _density_loss_kernel(x_ref, y_ref, out_ref, *, threshold, eps, rows,
                         block_rows, blocks_per_core, nblocks, all_full):
    c = pl.program_id(0)   # core-shard axis ("parallel")
    i = pl.program_id(1)   # row-block walk ("arbitrary", reduction)

    @pl.when(i == 0)
    def _():
        out_ref[...] = jnp.zeros_like(out_ref)

    def charbonnier():
        x = x_ref[...]
        y = y_ref[...]
        if threshold > 0.0:
            # nn.Threshold(threshold, eps): keep x where x > threshold else eps.
            # Compare/select in the native dtype (exact; packs 2/lane for bf16).
            x = jnp.where(x > jnp.asarray(threshold, x.dtype), x,
                          jnp.asarray(eps, x.dtype))
        d = x.astype(jnp.float32) - y.astype(jnp.float32)
        return jnp.sqrt(d * d + jnp.float32(eps * eps))

    def fold(val):
        # VPU-only partial reduction into a vreg-shaped (8,128) tile; the
        # cross-lane reduce happens once, in XLA, outside the kernel.
        r, l = val.shape
        return val.reshape(r // SUBLANES, SUBLANES, l).sum(axis=0)

    if all_full:
        # The grid tiles the array exactly: every block is full and in range,
        # so no masking math at all (fast path for the common case).
        out_ref[...] += fold(charbonnier())
    else:
        block_idx = c * blocks_per_core + i
        row0 = block_idx * block_rows
        in_range = block_idx < nblocks           # clamped duplicate blocks
        is_full = row0 + block_rows <= rows      # ragged last block

        @pl.when(jnp.logical_and(in_range, is_full))
        def _fast():   # interior blocks: mask-free
            out_ref[...] += fold(charbonnier())

        @pl.when(jnp.logical_and(in_range, jnp.logical_not(is_full)))
        def _ragged():  # last block: block-local row mask (no int32 overflow)
            val = charbonnier()
            r_iota = jax.lax.broadcasted_iota(jnp.int32, val.shape, 0)
            val = jnp.where(r_iota < (rows - row0), val, jnp.float32(0.0))
            out_ref[...] += fold(val)


def density_loss(x, y, threshold, eps=1e-6, block_rows=None):
    """JAX/Pallas equivalent of DensityLoss(threshold, eps).forward(x, y)."""
    assert x.shape == y.shape
    total = int(np.prod(y.shape))
    denom = float(total)  # == b * c * d * h * w

    xf = x.reshape(-1)
    yf = y.reshape(-1)

    # Largest prefix forming a lane-dense (rows, 128) slab with rows % 8 == 0.
    rows = (total // (SUBLANES * LANES)) * SUBLANES
    total_main = rows * LANES

    loss_sum = jnp.float32(0.0)

    if rows > 0:
        x2 = xf[:total_main].reshape(rows, LANES)
        y2 = yf[:total_main].reshape(rows, LANES)

        itemsize = max(int(x.dtype.itemsize), int(y.dtype.itemsize))
        if block_rows is None:
            # 2 MiB per input per pipeline buffer, dtype-scaled:
            # 4096 rows f32 / 8192 rows bf16 -> 8 MiB total double-buffered.
            block_rows = (2 * 1024 * 1024) // (LANES * itemsize)
        block_rows = max(SUBLANES, min(int(block_rows), rows))
        block_rows = (block_rows // SUBLANES) * SUBLANES

        nblocks = -(-rows // block_rows)
        num_cores = _detect_num_cores()
        blocks_per_core = -(-nblocks // num_cores)
        all_full = (rows % block_rows == 0) and (nblocks % num_cores == 0)

        def in_index_map(c, i):
            # Clamp so the DMA never starts past the last block; the clamped
            # duplicates contribute nothing (skipped inside the kernel).
            return (jnp.minimum(c * blocks_per_core + i, nblocks - 1), 0)

        kernel = functools.partial(
            _density_loss_kernel,
            threshold=float(threshold), eps=float(eps), rows=rows,
            block_rows=block_rows, blocks_per_core=blocks_per_core,
            nblocks=nblocks, all_full=all_full)

        partials = pl.pallas_call(
            kernel,
            out_shape=jax.ShapeDtypeStruct((num_cores * SUBLANES, LANES),
                                           jnp.float32),
            grid_spec=pltpu.PrefetchScalarGridSpec(
                num_scalar_prefetch=0,
                grid=(num_cores, blocks_per_core),
                in_specs=[pl.BlockSpec((block_rows, LANES), in_index_map),
                          pl.BlockSpec((block_rows, LANES), in_index_map)],
                out_specs=pl.BlockSpec((SUBLANES, LANES), lambda c, i: (c, 0)),
            ),
            compiler_params=pltpu.CompilerParams(
                dimension_semantics=("parallel", "arbitrary")),
            cost_estimate=pl.CostEstimate(
                flops=6 * total_main,
                transcendentals=total_main,
                bytes_accessed=total_main * (int(x.dtype.itemsize)
                                             + int(y.dtype.itemsize))),
        )(x2, y2)
        loss_sum = jnp.sum(partials)

    if total_main < total:
        # <1024-element tail: handled in plain XLA (no full-array pad / copy).
        tx = xf[total_main:]
        ty = yf[total_main:]
        if float(threshold) > 0.0:
            tx = jnp.where(tx > jnp.asarray(threshold, tx.dtype), tx,
                           jnp.asarray(eps, tx.dtype))
        d = tx.astype(jnp.float32) - ty.astype(jnp.float32)
        loss_sum = loss_sum + jnp.sum(jnp.sqrt(d * d + jnp.float32(eps * eps)))

    return loss_sum / jnp.float32(denom)


# TODO(synk): update_threshold() is training-time state mutation; pass the
# current threshold value as an argument to density_loss instead.


def _reference(x, y, threshold, eps=1e-6):
    xf = x
    if threshold > 0.0:
        xf = jnp.where(x > jnp.asarray(threshold, x.dtype), x,
                       jnp.asarray(eps, x.dtype))
    xf = xf.astype(jnp.float32)
    yf = y.astype(jnp.float32)
    b, c, d, h, w = y.shape
    return jnp.sum(jnp.sqrt((xf - yf) ** 2 + jnp.float32(eps * eps))) / (
        c * b * d * h * w)


if __name__ == "__main__":
    key = jax.random.PRNGKey(0)

    # (shape, threshold, block_rows override)
    cases = [
        ((2, 4, 8, 16, 16), 0.5, None),   # lane-aligned, single full block
        ((2, 3, 5, 7, 11), 0.5, None),    # unaligned: XLA tail path
        ((1, 1, 2, 40, 64), 0.25, 16),    # multi-block + ragged last block
    ]

    k = key
    for shape, threshold, br in cases:
        k, kx, ky = jax.random.split(k, 3)
        x = jax.random.normal(kx, shape, dtype=jnp.float32)
        y = jax.random.normal(ky, shape, dtype=jnp.float32)

        out = density_loss(x, y, threshold, 1e-6, block_rows=br)
        out = jax.block_until_ready(out)

        ref = _reference(x, y, threshold, 1e-6)
        assert np.allclose(np.asarray(out), np.asarray(ref),
                           rtol=5e-5, atol=1e-6), (shape, float(out), float(ref))

    print("KERNEL_OK")
</pallas_src>

<mosaic_0001>
module attributes {stable_mosaic.version = 11 : i64} {
  func.func @_density_loss_kernel(%arg0: i32, %arg1: i32, %arg2: memref<128x128xf32, #tpu.memory_space<vmem>>, %arg3: memref<128x128xf32, #tpu.memory_space<vmem>>, %arg4: memref<8x128xf32, #tpu.memory_space<vmem>>) attributes {dimension_semantics = [#tpu.dimension_semantics<parallel>, #tpu.dimension_semantics<arbitrary>], iteration_bounds = array<i64: 1, 1>, scalar_prefetch = 0 : i64, scratch_operands = 0 : i64, tpu.core_type = #tpu.core_type<tc>, window_params = [{transform_indices = @transform_0, window_bounds = array<i64: 128, 128>}, {transform_indices = @transform_1, window_bounds = array<i64: 128, 128>}, {transform_indices = @transform_2, window_bounds = array<i64: 8, 128>}]} {
    %c0_i32 = arith.constant 0 : i32
    %0 = arith.cmpi eq, %arg1, %c0_i32 : i32
    %1 = arith.extui %0 : i1 to i32
    %c0_i32_0 = arith.constant 0 : i32
    %2 = arith.cmpi ne, %1, %c0_i32_0 : i32
    scf.if %2 {
      %cst_11 = arith.constant 0.000000e+00 : f32
      %19 = vector.broadcast %cst_11 : f32 to vector<8x128xf32>
      %c0_12 = arith.constant 0 : index
      %c0_13 = arith.constant 0 : index
      %20 = vector.load %arg4[%c0_12, %c0_13] : memref<8x128xf32, #tpu.memory_space<vmem>>, vector<8x128xf32>
      tpu.vector_store %arg4[%c0_12, %c0_13], %19 {strides = array<i32>} : memref<8x128xf32, #tpu.memory_space<vmem>>, vector<8x128xf32>,
    } else {
    }
    %c0 = arith.constant 0 : index
    %c0_1 = arith.constant 0 : index
    %3 = vector.load %arg4[%c0, %c0_1] : memref<8x128xf32, #tpu.memory_space<vmem>>, vector<8x128xf32>
    %c0_2 = arith.constant 0 : index
    %c0_3 = arith.constant 0 : index
    %4 = vector.load %arg2[%c0_2, %c0_3] : memref<128x128xf32, #tpu.memory_space<vmem>>, vector<128x128xf32>
    %c0_4 = arith.constant 0 : index
    %c0_5 = arith.constant 0 : index
    %5 = vector.load %arg3[%c0_4, %c0_5] : memref<128x128xf32, #tpu.memory_space<vmem>>, vector<128x128xf32>
    %cst = arith.constant 5.000000e-01 : f32
    %6 = vector.broadcast %cst : f32 to vector<128x128xf32>
    %7 = arith.cmpf ogt, %4, %6 : vector<128x128xf32>
    %cst_6 = arith.constant 9.99999997E-7 : f32
    %8 = vector.broadcast %cst_6 : f32 to vector<128x128xf32>
    %9 = arith.select %7, %4, %8 : vector<128x128xi1>, vector<128x128xf32>
    %10 = arith.subf %9, %5 : vector<128x128xf32>
    %11 = arith.mulf %10, %10 : vector<128x128xf32>
    %cst_7 = arith.constant 9.99999996E-13 : f32
    %12 = vector.broadcast %cst_7 : f32 to vector<128x128xf32>
    %13 = arith.addf %11, %12 : vector<128x128xf32>
    %14 = math.sqrt %13 : vector<128x128xf32>
    %15 = vector.shape_cast %14 : vector<128x128xf32> to vector<16x8x128xf32>
    %cst_8 = arith.constant dense<0.000000e+00> : vector<8x128xf32>
    %16 = vector.multi_reduction <add>, %15, %cst_8 [0] : vector<16x8x128xf32> to vector<8x128xf32>
    %17 = arith.addf %3, %16 : vector<8x128xf32>
    %c0_9 = arith.constant 0 : index
    %c0_10 = arith.constant 0 : index
    %18 = vector.load %arg4[%c0_9, %c0_10] : memref<8x128xf32, #tpu.memory_space<vmem>>, vector<8x128xf32>
    tpu.vector_store %arg4[%c0_9, %c0_10], %17 {strides = array<i32>} : memref<8x128xf32, #tpu.memory_space<vmem>>, vector<8x128xf32>,
    return
  }
  func.func @transform_0(%arg0: i32, %arg1: i32) -> (i32, i32) {
    %c1_i32 = arith.constant 1 : i32
    %0 = arith.muli %arg0, %c1_i32 : i32
    %1 = arith.addi %0, %arg1 : i32
    %c0_i32 = arith.constant 0 : i32
    %2 = arith.minsi %1, %c0_i32 : i32
    %c0_i32_0 = arith.constant 0 : i32
    %c0_i32_1 = arith.constant 0 : i32
    return %2, %c0_i32_0 : i32, i32
  }
  func.func @transform_1(%arg0: i32, %arg1: i32) -> (i32, i32) {
    %c1_i32 = arith.constant 1 : i32
    %0 = arith.muli %arg0, %c1_i32 : i32
    %1 = arith.addi %0, %arg1 : i32
    %c0_i32 = arith.constant 0 : i32
    %2 = arith.minsi %1, %c0_i32 : i32
    %c0_i32_0 = arith.constant 0 : i32
    %c0_i32_1 = arith.constant 0 : i32
    return %2, %c0_i32_0 : i32, i32
  }
  func.func @transform_2(%arg0: i32, %arg1: i32) -> (i32, i32) {
    %c0_i32 = arith.constant 0 : i32
    %c0_i32_0 = arith.constant 0 : i32
    return %arg0, %c0_i32 : i32, i32
  }
}

</mosaic_0001>

<bundles_post_ra>
// kernel: tpu_custom_call.1
= control target key start
LH: loop header
LB: loop body
LE: loop exit
PB: predicated region body
PF: predicated region fallthrough
CT: control target
= control target key end

     0   :  { %7 = vsyncpa [#allocation3], 0  ;;  %s632_s0 = inlined_call_operand.hbm [shape: f32[128,128], index: 0, kind: input, shape index: {}]   ;;  %s633_s1 = inlined_call_operand.hbm [shape: f32[128,128], index: 1, kind: input, shape index: {}]   ;;  %s634_s2 = inlined_call_operand.hbm [shape: f32[8,128], index: 2, kind: output, shape index: {}]  }
   0x1   :  { %8 = vsyncpa [#allocation6], 0 }
   0x2   :  { %9 = vsyncpa [#allocation4], 0  ;;  %s437_s9 = smov [#allocation2]   ;;  %s365_s13 = scalar_lea.hbm %s632_s0, 2048 }
   0x3   :  { %s21_s10 = sshll.u32 %s437_s9, 4  ;;  %p366_p0 = scmp.ne.s32.totalorder %s632_s0, %s365_s13  ;;  %s22_s10 = int_to_ptr.vmem [resolvable:$true] %s21_s10 }
   0x4   :  { %p369_p1 = scmp.lt.u32.totalorder %s365_s13, %s632_s0 }
   0x6   :  { %p371_p2 = pnand %p369_p1, %p366_p0 }
   0x8   :  { %374 = shalt.err (!%p371_p2)
}
   0x9   :  { %s375_s18 = scalar_lea.vmem %s22_s10, 2048  ;;  %p380_p4 = scmp.lt.s32.totalorder %s22_s10, %s22_s10 }
   0xa   :  { %p376_p3 = scmp.ne.s32.totalorder %s22_s10, %s375_s18  ;;  %p381_p5 = scmp.lt.s32.totalorder %s375_s18, %s375_s18 }
   0xc   :  { %p382_p6 = por %p381_p5, %p380_p4 }
   0xe   :  { %p383_p7 = pnand %p382_p6, %p376_p3 }
  0x10   :  { %386 = shalt.err (!%p383_p7)
}
  0x11   :  { %s438_s19 = smov 128   ;;  %s439_s20 = smov 8  }
  0x12   :  { %27 = dma.hbm_to_vmem [thread:$0]  %s632_s0, 2048, %s22_s10, [#allocation3], %s438_s19, %s438_s19, %s439_s20  }
  0x13   :  { %s440_s23 = smov [#allocation5]   ;;  %s387_s27 = scalar_lea.hbm %s633_s1, 2048 }
  0x14   :  { %s39_s24 = sshll.u32 %s440_s23, 4  ;;  %p388_p8 = scmp.ne.s32.totalorder %s633_s1, %s387_s27  ;;  %s40_s24 = int_to_ptr.vmem [resolvable:$true] %s39_s24 }
  0x15   :  { %p391_p9 = scmp.lt.u32.totalorder %s387_s27, %s633_s1 }
  0x17   :  { %p393_p10 = pnand %p391_p9, %p388_p8 }
  0x19   :  { %396 = shalt.err (!%p393_p10)
}
  0x1a   :  { %s397_s4 = scalar_lea.vmem %s40_s24, 2048  ;;  %p402_p12 = scmp.lt.s32.totalorder %s40_s24, %s40_s24 }
  0x1b   :  { %p398_p11 = scmp.ne.s32.totalorder %s40_s24, %s397_s4  ;;  %p403_p13 = scmp.lt.s32.totalorder %s397_s4, %s397_s4 }
  0x1d   :  { %p404_p0 = por %p403_p13, %p402_p12 }
  0x1f   :  { %p405_p1 = pnand %p404_p0, %p398_p11 }
  0x21   :  { %408 = shalt.err (!%p405_p1)
}
  0x22   :  { %45 = dma.hbm_to_vmem [thread:$0]  %s633_s1, 2048, %s40_s24, [#allocation6], %s438_s19, %s438_s19, %s439_s20  }
  0x23   :  { %431 = dma.done.wait [#allocation3], 2048  }
  0x24   :  { %432 = vsyncadd [#allocation3], 4294965248 }
  0x25   :  { %433 = dma.done.wait [#allocation6], 2048  }
  0x26   :  { %434 = vsyncadd [#allocation6], 4294965248  ;;  %v66_v0 = vld [vmem:[#allocation2] sm:$0xff]  ;;  %v67_v1 = vld [vmem:[#allocation2 + $0x8] sm:$0xff]  ;;  %s441_s1 = smov [#allocation7]  }
  0x27   :  { %v68_v2 = vld [vmem:[#allocation2 + $0x10] sm:$0xff]  ;;  %vm98_vm0 = vcmp.gt.f32.partialorder %v66_v0, 0.5  ;;  %vm99_vm1 = vcmp.gt.f32.partialorder %v67_v1, 0.5  ;;  %v69_v3 = vld [vmem:[#allocation2 + $0x18] sm:$0xff]  ;;  %v82_v4 = vld [vmem:[#allocation5] sm:$0xff]  ;;  %s313_s6 = sshll.u32 %s441_s1, 4  ;;  %s314_s6 = int_to_ptr.vmem [resolvable:$true] %s313_s6 }
  0x28   :  { %vm100_vm2 = vcmp.gt.f32.partialorder %v68_v2, 0.5  ;;  %v114_v5 = vsel %vm98_vm0, %v66_v0, 1e-06  ;;  %v70_v6 = vld [vmem:[#allocation2 + $0x20] sm:$0xff]  ;;  %v83_v7 = vld [vmem:[#allocation5 + $0x8] sm:$0xff]  ;;  %vm101_vm3 = vcmp.gt.f32.partialorder %v69_v3, 0.5  ;;  %p414_p3 = scmp.lt.s32.totalorder %s314_s6, %s314_s6 }
  0x29   :  { %v115_v8 = vsel %vm99_vm1, %v67_v1, 1e-06  ;;  %v71_v9 = vld [vmem:[#allocation2 + $0x28] sm:$0xff]  ;;  %v84_v10 = vld [vmem:[#allocation5 + $0x10] sm:$0xff]  ;;  %v116_v11 = vsel %vm100_vm2, %v68_v2, 1e-06  ;;  %v130_v12 = vsub.f32 %v114_v5, %v82_v4 }
  0x2a   :  { %vm102_vm4 = vcmp.gt.f32.partialorder %v70_v6, 0.5  ;;  %v131_v13 = vsub.f32 %v115_v8, %v83_v7  ;;  %v72_v14 = vld [vmem:[#allocation2 + $0x30] sm:$0xff]  ;;  %v85_v15 = vld [vmem:[#allocation5 + $0x18] sm:$0xff]  ;;  %v117_v16 = vsel %vm101_vm3, %v69_v3, 1e-06  ;;  %vm103_vm5 = vcmp.gt.f32.partialorder %v71_v9, 0.5 }
  0x2b   :  { %v132_v17 = vsub.f32 %v116_v11, %v84_v10  ;;  %v73_v18 = vld [vmem:[#allocation2 + $0x38] sm:$0xff]  ;;  %v86_v19 = vld [vmem:[#allocation5 + $0x20] sm:$0xff]  ;;  %v118_v20 = vsel %vm102_vm4, %v70_v6, 1e-06  ;;  %v146_v21 = vmul.f32 %v130_v12, %v130_v12  ;;  %vm104_vm6 = vcmp.gt.f32.partialorder %v72_v14, 0.5  ;;  %v87_v25 = vld [vmem:[#allocation5 + $0x28] sm:$0xff] }
  0x2c   :  { %v133_v22 = vsub.f32 %v117_v16, %v85_v15  ;;  %v147_v23 = vmul.f32 %v131_v13, %v131_v13  ;;  %v74_v24 = vld [vmem:[#allocation2 + $0x40] sm:$0xff]  ;;  %v119_v26 = vsel %vm103_vm5, %v71_v9, 1e-06  ;;  %v75_v27 = vld [vmem:[#allocation2 + $0x48] sm:$0xff]  ;;  %v76_v28 = vld [vmem:[#allocation2 + $0x50] sm:$0xff]  ;;  %vm105_vm7 = vcmp.gt.f32.partialorder %v73_v18, 0.5 }
  0x2d   :  { %v77_v29 = vld [vmem:[#allocation2 + $0x58] sm:$0xff]  ;;  %v134_v30 = vsub.f32 %v118_v20, %v86_v19  ;;  %v148_v31 = vmul.f32 %v132_v17, %v132_v17  ;;  %v78_v32 = vld [vmem:[#allocation2 + $0x60] sm:$0xff]  ;;  %v88_v33 = vld [vmem:[#allocation5 + $0x30] sm:$0xff]  ;;  %v120_v34 = vsel %vm104_vm6, %v72_v14, 1e-06  ;;  %vm106_vm8 = vcmp.gt.f32.partialorder %v74_v24, 0.5 }
  0x2e   :  { %v481_v35 = vadd.f32 1e-12, %v146_v21  ;;  %v79_v36 = vld [vmem:[#allocation2 + $0x68] sm:$0xff]  ;;  %v80_v37 = vld [vmem:[#allocation2 + $0x70] sm:$0xff]  ;;  %v135_v38 = vsub.f32 %v119_v26, %v87_v25  ;;  %v149_v39 = vmul.f32 %v133_v22, %v133_v22  ;;  %v483_v40 = vadd.f32 1e-12, %v147_v23 }
  0x2f   :  { %v89_v41 = vld [vmem:[#allocation5 + $0x38] sm:$0xff]  ;;  %vm107_vm9 = vcmp.gt.f32.partialorder %v75_v27, 0.5  ;;  %vm108_vm10 = vcmp.gt.f32.partialorder %v76_v28, 0.5  ;;  %vm109_vm11 = vcmp.gt.f32.partialorder %v77_v29, 0.5  ;;  %v121_v42 = vsel %vm105_vm7, %v73_v18, 1e-06 }
  0x30   :  { %v81_v43 = vld [vmem:[#allocation2 + $0x78] sm:$0xff]  ;;  %vm110_vm12 = vcmp.gt.f32.partialorder %v78_v32, 0.5  ;;  %v136_v44 = vsub.f32 %v120_v34, %v88_v33  ;;  %v150_v45 = vmul.f32 %v134_v30, %v134_v30  ;;  %v486_v46 = vadd.f32 1e-12, %v148_v31  ;;  %v90_v47 = vld [vmem:[#allocation5 + $0x40] sm:$0xff]  ;;  %v91_v52 = vld [vmem:[#allocation5 + $0x48] sm:$0xff] }
  0x31   :  { %vm111_vm13 = vcmp.gt.f32.partialorder %v79_v36, 0.5  ;;  %vm112_vm14 = vcmp.gt.f32.partialorder %v80_v37, 0.5  ;;  %v122_v48 = vsel %vm106_vm8, %v74_v24, 1e-06  ;;  %333 = vrsqrt.f32 %v481_v35  ;;  %v92_v55 = vld [vmem:[#allocation5 + $0x50] sm:$0xff]  ;;  %v93_v56 = vld [vmem:[#allocation5 + $0x58] sm:$0xff] }
  0x32   :  { %v137_v49 = vsub.f32 %v121_v42, %v89_v41  ;;  %v151_v50 = vmul.f32 %v135_v38, %v135_v38  ;;  %v490_v51 = vadd.f32 1e-12, %v149_v39  ;;  %335 = vrsqrt.f32 %v483_v40  ;;  %v94_v63 = vld [vmem:[#allocation5 + $0x60] sm:$0xff]  ;;  %v95_v0 = vld [vmem:[#allocation5 + $0x68] sm:$0xff]  ;;  %v96_v4 = vld [vmem:[#allocation5 + $0x70] sm:$0xff]  ;;  %s409_s7 = scalar_lea.vmem %s314_s6, 128 }
  0x33   :  { %vm113_vm15 = vcmp.gt.f32.partialorder %v81_v43, 0.5  ;;  %v123_v53 = vsel %vm107_vm9, %v75_v27, 1e-06  ;;  %v124_v54 = vsel %vm108_vm10, %v76_v28, 1e-06  ;;  %v138_v57 = vsub.f32 %v122_v48, %v90_v47  ;;  %v97_v8 = vld [vmem:[#allocation5 + $0x78] sm:$0xff]  ;;  %p410_p2 = scmp.ne.s32.totalorder %s314_s6, %s409_s7  ;;  %p415_p4 = scmp.lt.s32.totalorder %s409_s7, %s409_s7 }
  0x34   :  { %v152_v58 = vmul.f32 %v136_v44, %v136_v44  ;;  %v495_v59 = vadd.f32 1e-12, %v150_v45  ;;  %337 = vrsqrt.f32 %v486_v46  ;;  %v125_v60 = vsel %vm109_vm11, %v77_v29, 1e-06 }
  0x35   :  { %v126_v61 = vsel %vm110_vm12, %v78_v32, 1e-06  ;;  %v127_v62 = vsel %vm111_vm13, %v79_v36, 1e-06  ;;  %v139_v1 = vsub.f32 %v123_v53, %v91_v52  ;;  %v153_v2 = vmul.f32 %v137_v49, %v137_v49  ;;  %p416_p5 = por %p415_p4, %p414_p3 }
  0x36   :  { %v501_v3 = vadd.f32 1e-12, %v151_v50  ;;  %339 = vrsqrt.f32 %v490_v51  ;;  %v128_v5 = vsel %vm112_vm14, %v80_v37, 1e-06  ;;  %v129_v6 = vsel %vm113_vm15, %v81_v43, 1e-06 }
  0x37   :  { %v140_v7 = vsub.f32 %v124_v54, %v92_v55  ;;  %v141_v9 = vsub.f32 %v125_v60, %v93_v56  ;;  %v154_v10 = vmul.f32 %v138_v57, %v138_v57  ;;  %v506_v11 = vadd.f32 1e-12, %v152_v58  ;;  %p417_p6 = pnand %p416_p5, %p410_p2 }
  0x38   :  { %341 = vrsqrt.f32 %v495_v59  ;;  %v142_v12 = vsub.f32 %v126_v61, %v94_v63  ;;  %v143_v13 = vsub.f32 %v127_v62, %v95_v0  ;;  %v144_v14 = vsub.f32 %v128_v5, %v96_v4 }
  0x39   :  { %v155_v15 = vmul.f32 %v139_v1, %v139_v1  ;;  %v509_v16 = vadd.f32 1e-12, %v153_v2  ;;  %343 = vrsqrt.f32 %v501_v3  ;;  %v145_v18 = vsub.f32 %v129_v6, %v97_v8 }
  0x3a   :  { %v156_v19 = vmul.f32 %v140_v7, %v140_v7  ;;  %v157_v21 = vmul.f32 %v141_v9, %v141_v9  ;;  %v512_v22 = vadd.f32 1e-12, %v154_v10  ;;  %345 = vrsqrt.f32 %v506_v11 }
  0x3b   :  { %v334_v17 = vpop.eup %333  ;;  %v158_v23 = vmul.f32 %v142_v12, %v142_v12  ;;  %v159_v24 = vmul.f32 %v143_v13, %v143_v13  ;;  %v160_v26 = vmul.f32 %v144_v14, %v144_v14  ;;  %v515_v27 = vadd.f32 1e-12, %v155_v15 }
  0x3c   :  { %v336_v20 = vpop.eup %335  ;;  %347 = vrsqrt.f32 %v509_v16  ;;  %v161_v28 = vmul.f32 %v145_v18, %v145_v18  ;;  %v518_v29 = vadd.f32 1e-12, %v156_v19  ;;  %v179_v30 = vmul.f32 %v334_v17, %v481_v35 }
  0x3d   :  { %v186_v31 = vmul.f32 %v336_v20, %v483_v40  ;;  %v522_v33 = vadd.f32 1e-12, %v157_v21  ;;  %vm180_vm0 = vcmp.eq.f32.partialorder %v481_v35, inf  ;;  %vm187_vm1 = vcmp.eq.f32.partialorder %v483_v40, inf }
  0x3e   :  { %v338_v25 = vpop.eup %337  ;;  %349 = vrsqrt.f32 %v512_v22  ;;  %v527_v34 = vadd.f32 1e-12, %v158_v23  ;;  %v529_v36 = vadd.f32 1e-12, %v159_v24  ;;  %vm182_vm2 = vcmp.eq.f32.partialorder %v481_v35, 0.0 }
  0x3f   :  { %v193_v37 = vmul.f32 %v338_v25, %v486_v46  ;;  %v183_v39 = vand.u32 2147483648, %v481_v35  ;;  %v190_v41 = vand.u32 2147483648, %v483_v40  ;;  %vm194_vm3 = vcmp.eq.f32.partialorder %v486_v46, inf }
  0x40   :  { %v340_v32 = vpop.eup %339  ;;  %351 = vrsqrt.f32 %v515_v27  ;;  %v181_v42 = vsel %vm180_vm0, %v481_v35, %v179_v30  ;;  %v188_v43 = vsel %vm187_vm1, %v483_v40, %v186_v31  ;;  %vm189_vm4 = vcmp.eq.f32.partialorder %v483_v40, 0.0 }
  0x41   :  { %v200_v44 = vmul.f32 %v340_v32, %v490_v51  ;;  %v541_v47 = vadd.f32 1e-12, %v160_v26  ;;  %v197_v48 = vand.u32 2147483648, %v486_v46  ;;  %vm201_vm5 = vcmp.eq.f32.partialorder %v490_v51, inf }
  0x42   :  { %v342_v38 = vpop.eup %341  ;;  %353 = vrsqrt.f32 %v518_v29  ;;  %v195_v49 = vsel %vm194_vm3, %v486_v46, %v193_v37  ;;  %vm196_vm6 = vcmp.eq.f32.partialorder %v486_v46, 0.0  ;;  %v204_v50 = vand.u32 2147483648, %v490_v51 }
  0x43   :  { %v344_v45 = vpop.eup %343  ;;  %v207_v52 = vmul.f32 %v342_v38, %v495_v59  ;;  %v184_v53 = vsel %vm182_vm2, %v183_v39, %v181_v42  ;;  %v191_v54 = vsel %vm189_vm4, %v190_v41, %v188_v43  ;;  %vm208_vm7 = vcmp.eq.f32.partialorder %v495_v59, inf }
  0x44   :  { %v346_v40 = vpop.eup %345  ;;  %355 = vrsqrt.f32 %v522_v33  ;;  %v554_v55 = vadd.f32 1e-12, %v161_v28  ;;  %v202_v56 = vsel %vm201_vm5, %v490_v51, %v200_v44  ;;  %vm203_vm8 = vcmp.eq.f32.partialorder %v490_v51, 0.0 }
  0x45   :  { %v214_v46 = vmul.f32 %v344_v45, %v501_v3  ;;  %v198_v58 = vsel %vm196_vm6, %v197_v48, %v195_v49  ;;  %v211_v60 = vand.u32 2147483648, %v495_v59  ;;  %vm215_vm9 = vcmp.eq.f32.partialorder %v501_v3, inf }
  0x46   :  { %v348_v57 = vpop.eup %347  ;;  %357 = vrsqrt.f32 %v527_v34  ;;  %v209_v35 = vsel %vm208_vm7, %v495_v59, %v207_v52  ;;  %vm210_vm10 = vcmp.eq.f32.partialorder %v495_v59, 0.0  ;;  %v221_v61 = vmul.f32 %v346_v40, %v506_v11 }
  0x47   :  { %v290_v62 = vadd.f32 %v191_v54, %v184_v53  ;;  %v205_v0 = vsel %vm203_vm8, %v204_v50, %v202_v56  ;;  %v218_v51 = vand.u32 2147483648, %v501_v3  ;;  %vm222_vm11 = vcmp.eq.f32.partialorder %v506_v11, inf }
  0x48   :  { %v350_v63 = vpop.eup %349  ;;  %359 = vrsqrt.f32 %v529_v36  ;;  %v216_v1 = vsel %vm215_vm9, %v501_v3, %v214_v46  ;;  %vm217_vm12 = vcmp.eq.f32.partialorder %v501_v3, 0.0  ;;  %v228_v2 = vmul.f32 %v348_v57, %v509_v16 }
  0x49   :  { %v291_v4 = vadd.f32 %v290_v62, %v198_v58  ;;  %v212_v59 = vsel %vm210_vm10, %v211_v60, %v209_v35  ;;  %v225_v6 = vand.u32 2147483648, %v506_v11  ;;  %vm229_vm13 = vcmp.eq.f32.partialorder %v509_v16, inf }
  0x4a   :  { %v352_v5 = vpop.eup %351  ;;  %361 = vrsqrt.f32 %v541_v47  ;;  %v223_v7 = vsel %vm222_vm11, %v506_v11, %v221_v61  ;;  %vm224_vm14 = vcmp.eq.f32.partialorder %v506_v11, 0.0  ;;  %v235_v8 = vmul.f32 %v350_v63, %v512_v22 }
  0x4b   :  { %v292_v9 = vadd.f32 %v291_v4, %v205_v0  ;;  %v219_v3 = vsel %vm217_vm12, %v218_v51, %v216_v1  ;;  %v232_v12 = vand.u32 2147483648, %v509_v16  ;;  %vm236_vm15 = vcmp.eq.f32.partialorder %v512_v22, inf }
  0x4c   :  { %v354_v10 = vpop.eup %353  ;;  %363 = vrsqrt.f32 %v554_v55  ;;  %v230_v13 = vsel %vm229_vm13, %v509_v16, %v228_v2  ;;  %vm231_vm0 = vcmp.eq.f32.partialorder %v509_v16, 0.0  ;;  %v242_v14 = vmul.f32 %v352_v5, %v515_v27 }
  0x4d   :  { %v293_v15 = vadd.f32 %v292_v9, %v212_v59  ;;  %v226_v11 = vsel %vm224_vm14, %v225_v6, %v223_v7  ;;  %v239_v18 = vand.u32 2147483648, %v512_v22  ;;  %vm243_vm1 = vcmp.eq.f32.partialorder %v515_v27, inf }
  0x4e   :  { %v356_v17 = vpop.eup %355  ;;  %v237_v19 = vsel %vm236_vm15, %v512_v22, %v235_v8  ;;  %vm238_vm2 = vcmp.eq.f32.partialorder %v512_v22, 0.0  ;;  %v249_v20 = vmul.f32 %v354_v10, %v518_v29  ;;  %v233_v24 = vsel %vm231_vm0, %v232_v12, %v230_v13 }
  0x4f   :  { %v294_v21 = vadd.f32 %v293_v15, %v219_v3  ;;  %v246_v16 = vand.u32 2147483648, %v515_v27  ;;  %vm250_vm3 = vcmp.eq.f32.partialorder %v518_v29, inf  ;;  %v244_v25 = vsel %vm243_vm1, %v515_v27, %v242_v14 }
  0x50   :  { %v358_v23 = vpop.eup %357  ;;  %vm245_vm4 = vcmp.eq.f32.partialorder %v515_v27, 0.0  ;;  %v256_v26 = vmul.f32 %v356_v17, %v522_v33  ;;  %v240_v31 = vsel %vm238_vm2, %v239_v18, %v237_v19  ;;  %v253_v22 = vand.u32 2147483648, %v518_v29 }
  0x51   :  { %v295_v28 = vadd.f32 %v294_v21, %v226_v11  ;;  %vm257_vm5 = vcmp.eq.f32.partialorder %v522_v33, inf  ;;  %v251_v32 = vsel %vm250_vm3, %v518_v29, %v249_v20  ;;  %vm252_vm6 = vcmp.eq.f32.partialorder %v518_v29, 0.0 }
  0x52   :  { %v360_v30 = vpop.eup %359  ;;  %v263_v37 = vmul.f32 %v358_v23, %v527_v34  ;;  %v247_v41 = vsel %vm245_vm4, %v246_v16, %v244_v25  ;;  %v260_v27 = vand.u32 2147483648, %v522_v33  ;;  %vm264_vm7 = vcmp.eq.f32.partialorder %v527_v34, inf }
  0x53   :  { %v296_v38 = vadd.f32 %v295_v28, %v233_v24  ;;  %v258_v42 = vsel %vm257_vm5, %v522_v33, %v256_v26  ;;  %vm259_vm8 = vcmp.eq.f32.partialorder %v522_v33, 0.0  ;;  %v270_v43 = vmul.f32 %v360_v30, %v529_v36 }
  0x54   :  { %v362_v39 = vpop.eup %361  ;;  %v254_v48 = vsel %vm252_vm6, %v253_v22, %v251_v32  ;;  %v267_v29 = vand.u32 2147483648, %v527_v34  ;;  %vm271_vm9 = vcmp.eq.f32.partialorder %v529_v36, inf  ;;  %v265_v49 = vsel %vm264_vm7, %v527_v34, %v263_v37 }
  0x55   :  { %v297_v44 = vadd.f32 %v296_v38, %v240_v31  ;;  %vm266_vm10 = vcmp.eq.f32.partialorder %v527_v34, 0.0  ;;  %v277_v50 = vmul.f32 %v362_v39, %v541_v47  ;;  %v261_v40 = vsel %vm259_vm8, %v260_v27, %v258_v42 }
  0x56   :  { %v364_v45 = vpop.eup %363  ;;  %v274_v53 = vand.u32 2147483648, %v529_v36  ;;  %vm278_vm11 = vcmp.eq.f32.partialorder %v541_v47, inf  ;;  %v272_v33 = vsel %vm271_vm9, %v529_v36, %v270_v43  ;;  %vm273_vm12 = vcmp.eq.f32.partialorder %v529_v36, 0.0 }
  0x57   :  { %v298_v52 = vadd.f32 %v297_v44, %v247_v41  ;;  %v284_v54 = vmul.f32 %v364_v45, %v554_v55  ;;  %v268_v46 = vsel %vm266_vm10, %v267_v29, %v265_v49  ;;  %v281_v57 = vand.u32 2147483648, %v541_v47 }
  0x58   :  { %vm285_vm13 = vcmp.eq.f32.partialorder %v554_v55, inf  ;;  %v279_v34 = vsel %vm278_vm11, %v541_v47, %v277_v50  ;;  %vm280_vm14 = vcmp.eq.f32.partialorder %v541_v47, 0.0  ;;  %v275_v60 = vsel %vm273_vm12, %v274_v53, %v272_v33 }
  0x59   :  { %v299_v56 = vadd.f32 %v298_v52, %v254_v48  ;;  %v288_v35 = vand.u32 2147483648, %v554_v55  ;;  %v286_v61 = vsel %vm285_vm13, %v554_v55, %v284_v54  ;;  %vm287_vm15 = vcmp.eq.f32.partialorder %v554_v55, 0.0 }
  0x5a   :  { %v282_v62 = vsel %vm280_vm14, %v281_v57, %v279_v34 }
  0x5b   :  { %v300_v58 = vadd.f32 %v299_v56, %v261_v40  ;;  %v289_v0 = vsel %vm287_vm15, %v288_v35, %v286_v61 }
  0x5d   :  { %v301_v36 = vadd.f32 %v300_v58, %v268_v46 }
  0x5f   :  { %v302_v63 = vadd.f32 %v301_v36, %v275_v60 }
  0x61   :  { %v303_v51 = vadd.f32 %v302_v63, %v282_v62 }
  0x63   :  { %v304_v1 = vadd.f32 %v303_v51, %v289_v0 }
  0x65   :  { %306 = vst [vmem:[#allocation7] sm:$0xff] %v304_v1 }
  0x66   :  { %420 = shalt.err (!%p417_p6)
}
  0x67   :  { %s421_s10 = scalar_lea.hbm %s634_s2, 128 }
  0x68   :  { %p422_p7 = scmp.ne.s32.totalorder %s634_s2, %s421_s10  ;;  %p425_p8 = scmp.lt.u32.totalorder %s421_s10, %s634_s2 }
  0x6a   :  { %p427_p9 = pnand %p425_p8, %p422_p7 }
  0x6c   :  { %430 = shalt.err (!%p427_p9)
}
  0x6d   :  { %316 = dma.vmem_to_hbm [thread:$0]  %s314_s6, 128, %s634_s2, [#allocation4]  }
  0x6e   :  { %435 = dma.done.wait [#allocation4], 128  }
  0x6f   :  { %436 = vsyncadd [#allocation4], 4294967168 }
  0x70   :  { %320 = vsyncpa [#allocation3], 1 }
  0x71   :  { %321 = vsyncpa [#allocation6], 1 }
  0x72   :  { %322 = vsyncpa [#allocation4], 1 }

</bundles_post_ra>
